<compile_context>
chip_gen: v5e
topology: v5e:2x2
jax: 0.10.0
libtpu: 0.0.40
codegen_flags: <defaults>
</compile_context>

<pallas_src>
import jax
import jax.numpy as jnp
from jax.experimental import pallas as pl
from jax.experimental.pallas import tpu as pltpu

_LANE = 128  # vreg lane width


def _round_up(x, m):
    return ((x + m - 1) // m) * m


def _perceptron_kernel(x_ref, w1_ref, b1_ref, w2_ref, b2_ref, o_ref):
    # Layer 1: x @ w1 on the MXU with f32 accumulation, then bias add (f32).
    z = jnp.dot(x_ref[...], w1_ref[...], preferred_element_type=jnp.float32)
    z = z + b1_ref[...]                       # (tb, Hp) + (1, Hp) broadcast
    # sigmoid(z) == 0.5 * tanh(0.5 * z) + 0.5 : single EUP op, no VALU divide.
    h = 0.5 * jnp.tanh(0.5 * z) + 0.5
    # Layer 2: h @ w2 + b2.  No VMEM round-trip for h — feed the MXU directly.
    y = jnp.dot(h.astype(w2_ref.dtype), w2_ref[...],
                preferred_element_type=jnp.float32)
    o_ref[...] = (y + b2_ref[...]).astype(o_ref.dtype)


def _vmem_cap_bytes():
    """Per-generation scoped-VMEM cap (conservative on v7x: 64 MiB physical)."""
    try:
        kind = jax.devices()[0].device_kind.lower()
    except Exception:
        kind = ""
    if ("v5" in kind) or ("v6" in kind):
        return 96 * 1024 * 1024     # 128 MiB physical VMEM on v5e / v6e
    return 48 * 1024 * 1024         # v7x (64 MiB physical) and unknown chips


class PerceptronPallas:
    """Pads parameters once at construction; forward runs only the kernel."""

    def __init__(self, w1, b1, w2, b2, *, block_batch=512, compute_dtype=None):
        in_f, hid = w1.shape
        hid2, out_f = w2.shape
        assert hid2 == hid and b1.shape == (hid,) and b2.shape == (out_f,)

        self.in_f, self.hid, self.out_f = in_f, hid, out_f
        self.hid_p = _round_up(hid, _LANE)
        self.out_p = _round_up(out_f, _LANE)
        self.block_batch = int(block_batch)
        self.compute_dtype = compute_dtype

        cdt = compute_dtype if compute_dtype is not None else w1.dtype
        # Pad ONCE (hoisted out of the forward path); cached on device.
        self.w1p = jnp.zeros((in_f, self.hid_p), cdt).at[:, :hid].set(
            w1.astype(cdt))
        self.w2p = jnp.zeros((self.hid_p, self.out_p), cdt).at[:hid, :out_f].set(
            w2.astype(cdt))
        # Biases stay f32 so the bias add + sigmoid run in f32.
        self.b1p = jnp.zeros((1, self.hid_p), jnp.float32).at[0, :hid].set(
            b1.astype(jnp.float32))
        self.b2p = jnp.zeros((1, self.out_p), jnp.float32).at[0, :out_f].set(
            b2.astype(jnp.float32))

        self._vmem_cap = _vmem_cap_bytes()
        self._single_buf_weights = hasattr(pl, "Buffered")
        self._cache = {}

    # -- tile-size selection -------------------------------------------------
    def _choose_tb(self, B, x_dtype):
        cdt = self.compute_dtype if self.compute_dtype is not None else x_dtype
        sublane = 8 if jnp.dtype(cdt).itemsize >= 4 else 16
        if B <= sublane:
            return B                       # single full-extent tile (legal)
        # At least 2 tiles so ("parallel",) can shard across both v7x TCs.
        tb = min(_round_up(self.block_batch, sublane),
                 _round_up((B + 1) // 2, sublane))
        tb = max(tb, sublane)

        # Conservative VMEM estimate (assume double-buffered everything).
        ds = jnp.dtype(cdt).itemsize
        od = jnp.dtype(x_dtype).itemsize
        budget = int(0.7 * self._vmem_cap)

        def need(t):
            return (2 * t * self.in_f * ds            # streamed x tiles
                    + 2 * t * self.out_p * od          # streamed y tiles
                    + 2 * (self.in_f * self.hid_p
                           + self.hid_p * self.out_p) * ds   # weights
                    + 2 * (self.hid_p + self.out_p) * 4      # biases
                    + 2 * t * self.hid_p * 4)                # f32 hidden slack

        while tb > sublane and need(tb) > budget:
            tb = max(sublane, _round_up(tb // 2, sublane))
        return tb

    # -- pallas_call construction ---------------------------------------------
    def _build(self, B, tb, out_dtype, single_buf):
        in_f, hid_p, out_p = self.in_f, self.hid_p, self.out_p
        grid = (pl.cdiv(B, tb),)

        def resident(shape):
            kwargs = {}
            if single_buf:
                # Constant index_map -> single buffer is enough; halves the
                # VMEM the resident weights occupy.
                kwargs["pipeline_mode"] = pl.Buffered(1)
            return pl.BlockSpec(shape, lambda i: (0, 0), **kwargs)

        grid_spec = pltpu.PrefetchScalarGridSpec(
            num_scalar_prefetch=0,
            grid=grid,
            in_specs=[
                pl.BlockSpec((tb, in_f), lambda i: (i, 0)),   # x tile (streamed)
                resident((in_f, hid_p)),                      # w1 (VMEM resident)
                resident((1, hid_p)),                         # b1
                resident((hid_p, out_p)),                     # w2
                resident((1, out_p)),                         # b2
            ],
            out_specs=pl.BlockSpec((tb, out_p), lambda i: (i, 0)),
        )
        return pl.pallas_call(
            _perceptron_kernel,
            out_shape=jax.ShapeDtypeStruct((B, out_p), out_dtype),
            grid_spec=grid_spec,
            compiler_params=pltpu.CompilerParams(
                dimension_semantics=("parallel",),   # independent batch tiles
                vmem_limit_bytes=self._vmem_cap,
            ),
        )

    # -- forward ---------------------------------------------------------------
    def __call__(self, x):
        B = x.shape[0]
        out_dtype = x.dtype
        cdt = self.compute_dtype if self.compute_dtype is not None else x.dtype
        xin = x.astype(cdt)
        tb = self._choose_tb(B, x.dtype)

        def run(single_buf):
            key = (B, tb, str(xin.dtype), single_buf)
            fn = self._cache.get(key)
            if fn is None:
                fn = self._build(B, tb, out_dtype, single_buf)
                self._cache[key] = fn
            return fn(xin, self.w1p, self.b1p, self.w2p, self.b2p)

        if self._single_buf_weights:
            try:
                out = run(True)
            except Exception:
                # Fallback: jax version without BlockSpec pipeline_mode /
                # Buffered(1) support -> default double-buffered weights.
                self._single_buf_weights = False
                out = run(False)
        else:
            out = run(False)

        if self.out_p != self.out_f:
            out = out[:, : self.out_f]
        return out


def perceptron_ref(x, w1, b1, w2, b2):
    return jax.nn.sigmoid(x @ w1 + b1) @ w2 + b2


if __name__ == "__main__":
    # Small deterministic example mirroring the torch module's shapes.
    in_features, hidden_features, out_features = 32, 64, 16
    batch = 8

    key = jax.random.PRNGKey(0)
    kx, kw1, kb1, kw2, kb2 = jax.random.split(key, 5)

    x = jax.random.normal(kx, (batch, in_features), dtype=jnp.float32)
    w1 = jax.random.normal(kw1, (in_features, hidden_features), dtype=jnp.float32)
    b1 = jax.random.normal(kb1, (hidden_features,), dtype=jnp.float32)
    w2 = jax.random.normal(kw2, (hidden_features, out_features), dtype=jnp.float32)
    b2 = jax.random.normal(kb2, (out_features,), dtype=jnp.float32)

    model = PerceptronPallas(w1, b1, w2, b2)   # params padded once here
    out = model(x)
    out = jax.block_until_ready(out)

    ref = perceptron_ref(x, w1, b1, w2, b2)
    assert out.shape == (batch, out_features)
    assert jnp.allclose(out, ref, atol=1e-4, rtol=1e-4), "mismatch vs reference"

    print("KERNEL_OK")
</pallas_src>

<mosaic_0001>
module attributes {stable_mosaic.version = 11 : i64} {
  func.func @_perceptron_kernel(%arg0: i32, %arg1: memref<8x32xf32, #tpu.memory_space<vmem>>, %arg2: memref<32x128xf32, #tpu.memory_space<vmem>>, %arg3: memref<1x128xf32, #tpu.memory_space<vmem>>, %arg4: memref<128x128xf32, #tpu.memory_space<vmem>>, %arg5: memref<1x128xf32, #tpu.memory_space<vmem>>, %arg6: memref<8x128xf32, #tpu.memory_space<vmem>>) attributes {dimension_semantics = [#tpu.dimension_semantics<parallel>], iteration_bounds = array<i64: 1>, scalar_prefetch = 0 : i64, scratch_operands = 0 : i64, tpu.core_type = #tpu.core_type<tc>, window_params = [{transform_indices = @transform_0, window_bounds = array<i64: 8, 32>}, {pipeline_mode = #tpu.pipeline_mode<synchronous>, transform_indices = @transform_1, window_bounds = array<i64: 32, 128>}, {pipeline_mode = #tpu.pipeline_mode<synchronous>, transform_indices = @transform_2, window_bounds = array<i64: 1, 128>}, {pipeline_mode = #tpu.pipeline_mode<synchronous>, transform_indices = @transform_3, window_bounds = array<i64: 128, 128>}, {pipeline_mode = #tpu.pipeline_mode<synchronous>, transform_indices = @transform_4, window_bounds = array<i64: 1, 128>}, {transform_indices = @transform_5, window_bounds = array<i64: 8, 128>}]} {
    %c0 = arith.constant 0 : index
    %c0_0 = arith.constant 0 : index
    %0 = vector.load %arg1[%c0, %c0_0] : memref<8x32xf32, #tpu.memory_space<vmem>>, vector<8x32xf32>
    %c0_1 = arith.constant 0 : index
    %c0_2 = arith.constant 0 : index
    %1 = vector.load %arg2[%c0_1, %c0_2] : memref<32x128xf32, #tpu.memory_space<vmem>>, vector<32x128xf32>
    %cst = arith.constant dense<0.000000e+00> : vector<8x128xf32>
    %2 = tpu.matmul %0, %1, %cst {dimension_numbers = #tpu.dot_dimension_numbers<[1], [0], [0], [1], [0, 0, 1, 1], [], []>} : vector<8x32xf32>, vector<32x128xf32>, vector<8x128xf32> -> vector<8x128xf32>
    %c0_3 = arith.constant 0 : index
    %c0_4 = arith.constant 0 : index
    %3 = vector.load %arg3[%c0_3, %c0_4] : memref<1x128xf32, #tpu.memory_space<vmem>>, vector<1x128xf32>
    %4 = vector.broadcast %3 : vector<1x128xf32> to vector<8x128xf32>
    %5 = arith.addf %2, %4 : vector<8x128xf32>
    %cst_5 = arith.constant 5.000000e-01 : f32
    %6 = vector.broadcast %cst_5 : f32 to vector<8x128xf32>
    %7 = arith.mulf %6, %5 : vector<8x128xf32>
    %8 = math.tanh %7 : vector<8x128xf32>
    %cst_6 = arith.constant 5.000000e-01 : f32
    %9 = vector.broadcast %cst_6 : f32 to vector<8x128xf32>
    %10 = arith.mulf %9, %8 : vector<8x128xf32>
    %cst_7 = arith.constant 5.000000e-01 : f32
    %11 = vector.broadcast %cst_7 : f32 to vector<8x128xf32>
    %12 = arith.addf %10, %11 : vector<8x128xf32>
    %c0_8 = arith.constant 0 : index
    %c0_9 = arith.constant 0 : index
    %13 = vector.load %arg4[%c0_8, %c0_9] : memref<128x128xf32, #tpu.memory_space<vmem>>, vector<128x128xf32>
    %cst_10 = arith.constant dense<0.000000e+00> : vector<8x128xf32>
    %14 = tpu.matmul %12, %13, %cst_10 {dimension_numbers = #tpu.dot_dimension_numbers<[1], [0], [0], [1], [0, 0, 1, 1], [], []>} : vector<8x128xf32>, vector<128x128xf32>, vector<8x128xf32> -> vector<8x128xf32>
    %c0_11 = arith.constant 0 : index
    %c0_12 = arith.constant 0 : index
    %15 = vector.load %arg5[%c0_11, %c0_12] : memref<1x128xf32, #tpu.memory_space<vmem>>, vector<1x128xf32>
    %16 = vector.broadcast %15 : vector<1x128xf32> to vector<8x128xf32>
    %17 = arith.addf %14, %16 : vector<8x128xf32>
    %c0_13 = arith.constant 0 : index
    %c0_14 = arith.constant 0 : index
    %18 = vector.load %arg6[%c0_13, %c0_14] : memref<8x128xf32, #tpu.memory_space<vmem>>, vector<8x128xf32>
    tpu.vector_store %arg6[%c0_13, %c0_14], %17 {strides = array<i32>} : memref<8x128xf32, #tpu.memory_space<vmem>>, vector<8x128xf32>,
    return
  }
  func.func @transform_0(%arg0: i32) -> (i32, i32) {
    %c0_i32 = arith.constant 0 : i32
    %c0_i32_0 = arith.constant 0 : i32
    return %arg0, %c0_i32 : i32, i32
  }
  func.func @transform_1(%arg0: i32) -> (i32, i32) {
    %c0_i32 = arith.constant 0 : i32
    %c0_i32_0 = arith.constant 0 : i32
    %c0_i32_1 = arith.constant 0 : i32
    return %c0_i32, %c0_i32_0 : i32, i32
  }
  func.func @transform_2(%arg0: i32) -> (i32, i32) {
    %c0_i32 = arith.constant 0 : i32
    %c0_i32_0 = arith.constant 0 : i32
    %c0_i32_1 = arith.constant 0 : i32
    return %c0_i32, %c0_i32_0 : i32, i32
  }
  func.func @transform_3(%arg0: i32) -> (i32, i32) {
    %c0_i32 = arith.constant 0 : i32
    %c0_i32_0 = arith.constant 0 : i32
    %c0_i32_1 = arith.constant 0 : i32
    return %c0_i32, %c0_i32_0 : i32, i32
  }
  func.func @transform_4(%arg0: i32) -> (i32, i32) {
    %c0_i32 = arith.constant 0 : i32
    %c0_i32_0 = arith.constant 0 : i32
    %c0_i32_1 = arith.constant 0 : i32
    return %c0_i32, %c0_i32_0 : i32, i32
  }
  func.func @transform_5(%arg0: i32) -> (i32, i32) {
    %c0_i32 = arith.constant 0 : i32
    %c0_i32_0 = arith.constant 0 : i32
    return %arg0, %c0_i32 : i32, i32
  }
}

module attributes {stable_mosaic.version = 11 : i64} {
  func.func @_perceptron_kernel(%arg0: i32, %arg1: memref<8x32xf32, #tpu.memory_space<vmem>>, %arg2: memref<32x128xf32, #tpu.memory_space<vmem>>, %arg3: memref<1x128xf32, #tpu.memory_space<vmem>>, %arg4: memref<128x128xf32, #tpu.memory_space<vmem>>, %arg5: memref<1x128xf32, #tpu.memory_space<vmem>>, %arg6: memref<8x128xf32, #tpu.memory_space<vmem>>) attributes {dimension_semantics = [#tpu.dimension_semantics<parallel>], iteration_bounds = array<i64: 1>, scalar_prefetch = 0 : i64, scratch_operands = 0 : i64, tpu.core_type = #tpu.core_type<tc>, window_params = [{transform_indices = @transform_0, window_bounds = array<i64: 8, 32>}, {pipeline_mode = #tpu.pipeline_mode<synchronous>, transform_indices = @transform_1, window_bounds = array<i64: 32, 128>}, {pipeline_mode = #tpu.pipeline_mode<synchronous>, transform_indices = @transform_2, window_bounds = array<i64: 1, 128>}, {pipeline_mode = #tpu.pipeline_mode<synchronous>, transform_indices = @transform_3, window_bounds = array<i64: 128, 128>}, {pipeline_mode = #tpu.pipeline_mode<synchronous>, transform_indices = @transform_4, window_bounds = array<i64: 1, 128>}, {transform_indices = @transform_5, window_bounds = array<i64: 8, 128>}]} {
    %c0 = arith.constant 0 : index
    %c0_0 = arith.constant 0 : index
    %0 = vector.load %arg1[%c0, %c0_0] : memref<8x32xf32, #tpu.memory_space<vmem>>, vector<8x32xf32>
    %c0_1 = arith.constant 0 : index
    %c0_2 = arith.constant 0 : index
    %1 = vector.load %arg2[%c0_1, %c0_2] : memref<32x128xf32, #tpu.memory_space<vmem>>, vector<32x128xf32>
    %cst = arith.constant dense<0.000000e+00> : vector<8x128xf32>
    %2 = tpu.matmul %0, %1, %cst {dimension_numbers = #tpu.dot_dimension_numbers<[1], [0], [0], [1], [0, 0, 1, 1], [], []>} : vector<8x32xf32>, vector<32x128xf32>, vector<8x128xf32> -> vector<8x128xf32>
    %c0_3 = arith.constant 0 : index
    %c0_4 = arith.constant 0 : index
    %3 = vector.load %arg3[%c0_3, %c0_4] : memref<1x128xf32, #tpu.memory_space<vmem>>, vector<1x128xf32>
    %4 = vector.broadcast %3 : vector<1x128xf32> to vector<8x128xf32>
    %5 = arith.addf %2, %4 : vector<8x128xf32>
    %cst_5 = arith.constant 5.000000e-01 : f32
    %6 = vector.broadcast %cst_5 : f32 to vector<8x128xf32>
    %7 = arith.mulf %6, %5 : vector<8x128xf32>
    %8 = math.tanh %7 : vector<8x128xf32>
    %cst_6 = arith.constant 5.000000e-01 : f32
    %9 = vector.broadcast %cst_6 : f32 to vector<8x128xf32>
    %10 = arith.mulf %9, %8 : vector<8x128xf32>
    %cst_7 = arith.constant 5.000000e-01 : f32
    %11 = vector.broadcast %cst_7 : f32 to vector<8x128xf32>
    %12 = arith.addf %10, %11 : vector<8x128xf32>
    %c0_8 = arith.constant 0 : index
    %c0_9 = arith.constant 0 : index
    %13 = vector.load %arg4[%c0_8, %c0_9] : memref<128x128xf32, #tpu.memory_space<vmem>>, vector<128x128xf32>
    %cst_10 = arith.constant dense<0.000000e+00> : vector<8x128xf32>
    %14 = tpu.matmul %12, %13, %cst_10 {dimension_numbers = #tpu.dot_dimension_numbers<[1], [0], [0], [1], [0, 0, 1, 1], [], []>} : vector<8x128xf32>, vector<128x128xf32>, vector<8x128xf32> -> vector<8x128xf32>
    %c0_11 = arith.constant 0 : index
    %c0_12 = arith.constant 0 : index
    %15 = vector.load %arg5[%c0_11, %c0_12] : memref<1x128xf32, #tpu.memory_space<vmem>>, vector<1x128xf32>
    %16 = vector.broadcast %15 : vector<1x128xf32> to vector<8x128xf32>
    %17 = arith.addf %14, %16 : vector<8x128xf32>
    %c0_13 = arith.constant 0 : index
    %c0_14 = arith.constant 0 : index
    %18 = vector.load %arg6[%c0_13, %c0_14] : memref<8x128xf32, #tpu.memory_space<vmem>>, vector<8x128xf32>
    tpu.vector_store %arg6[%c0_13, %c0_14], %17 {strides = array<i32>} : memref<8x128xf32, #tpu.memory_space<vmem>>, vector<8x128xf32>,
    return
  }
  func.func @transform_0(%arg0: i32) -> (i32, i32) {
    %c0_i32 = arith.constant 0 : i32
    %c0_i32_0 = arith.constant 0 : i32
    return %arg0, %c0_i32 : i32, i32
  }
  func.func @transform_1(%arg0: i32) -> (i32, i32) {
    %c0_i32 = arith.constant 0 : i32
    %c0_i32_0 = arith.constant 0 : i32
    %c0_i32_1 = arith.constant 0 : i32
    return %c0_i32, %c0_i32_0 : i32, i32
  }
  func.func @transform_2(%arg0: i32) -> (i32, i32) {
    %c0_i32 = arith.constant 0 : i32
    %c0_i32_0 = arith.constant 0 : i32
    %c0_i32_1 = arith.constant 0 : i32
    return %c0_i32, %c0_i32_0 : i32, i32
  }
  func.func @transform_3(%arg0: i32) -> (i32, i32) {
    %c0_i32 = arith.constant 0 : i32
    %c0_i32_0 = arith.constant 0 : i32
    %c0_i32_1 = arith.constant 0 : i32
    return %c0_i32, %c0_i32_0 : i32, i32
  }
  func.func @transform_4(%arg0: i32) -> (i32, i32) {
    %c0_i32 = arith.constant 0 : i32
    %c0_i32_0 = arith.constant 0 : i32
    %c0_i32_1 = arith.constant 0 : i32
    return %c0_i32, %c0_i32_0 : i32, i32
  }
  func.func @transform_5(%arg0: i32) -> (i32, i32) {
    %c0_i32 = arith.constant 0 : i32
    %c0_i32_0 = arith.constant 0 : i32
    return %arg0, %c0_i32 : i32, i32
  }
}

</mosaic_0001>

<bundles_post_ra>
// kernel: tpu_custom_call.1
= control target key start
LH: loop header
LB: loop body
LE: loop exit
PB: predicated region body
PF: predicated region fallthrough
CT: control target
= control target key end

     0   :  { %10 = vsyncpa [#allocation3], 0  ;;  %s329_s0 = inlined_call_operand.hbm [shape: f32[8,32], index: 0, kind: input, shape index: {}]   ;;  %s330_s1 = inlined_call_operand.hbm [shape: f32[32,128], index: 1, kind: input, shape index: {}]   ;;  %s331_s2 = inlined_call_operand.vmem [shape: f32[1,128], index: 2, kind: input, shape index: {}]   ;;  %s332_s3 = inlined_call_operand.hbm [shape: f32[128,128], index: 3, kind: input, shape index: {}]   ;;  %s333_s4 = inlined_call_operand.vmem [shape: f32[1,128], index: 4, kind: input, shape index: {}]   ;;  %s334_s5 = inlined_call_operand.hbm [shape: f32[8,128], index: 5, kind: output, shape index: {}]  }
   0x1   :  { %11 = vsyncpa [#allocation6], 0  ;;  %s28_s20 = sshll.u32 %s330_s1, 4  ;;  %s29_s20 = int_to_ptr.hbm [resolvable:$true] %s28_s20 }
   0x2   :  { %12 = vsyncpa [#allocation4], 0  ;;  %s275_s21 = smov [#allocation5]   ;;  %s18_s25 = sshll.u32 %s329_s0, 4  ;;  %s19_s25 = int_to_ptr.hbm [resolvable:$true] %s18_s25 }
   0x3   :  { %s30_s22 = sshll.u32 %s275_s21, 4  ;;  %s276_s26 = smov 128   ;;  %s31_s22 = int_to_ptr.vmem [resolvable:$true] %s30_s22 }
   0x4   :  { %s277_s27 = smov 8   ;;  %s278_s28 = smov [#allocation2]  }
   0x5   :  { %36 = dma.hbm_to_vmem [thread:$0]  %s29_s20, 512, %s31_s22, [#allocation6], %s276_s26, %s276_s26, %s277_s27  }
   0x6   :  { %s20_s29 = sshll.u32 %s278_s28, 4  ;;  %s43_s7 = sshll.u32 %s332_s3, 4  ;;  %s21_s29 = int_to_ptr.vmem [resolvable:$true] %s20_s29  ;;  %s44_s7 = int_to_ptr.hbm [resolvable:$true] %s43_s7 }
   0x7   :  { %23 = dma.hbm_to_vmem [thread:$0]  %s19_s25, 128, %s21_s29, [#allocation3]  }
   0x8   :  { %s279_s1 = smov [#allocation7]  }
   0x9   :  { %s45_s8 = sshll.u32 %s279_s1, 4  ;;  %s46_s8 = int_to_ptr.vmem [resolvable:$true] %s45_s8 }
   0xa   :  { %51 = dma.hbm_to_vmem [thread:$0]  %s44_s7, 2048, %s46_s8, [#allocation6], %s276_s26, %s276_s26, %s277_s27  }
   0xb   :  { %269 = dma.done.wait [#allocation3], 128  }
   0xc   :  { %270 = vsyncadd [#allocation3], 4294967168 }
   0xd   :  { %271 = dma.done.wait [#allocation6], 2560  }
   0xe   :  { %272 = vsyncadd [#allocation6], 4294964736  ;;  %v70_v0 = vld [vmem:[#allocation5 + $0x18] sm:$0xff]  ;;  %v69_v1 = vld [vmem:[#allocation5 + $0x10] sm:$0xff]  ;;  %vm75_vm0 = vcmask 261120   ;;  %s280_s11 = smov [#allocation8]  }
   0xf   :  { %91 = vmatpush.msra.mxu0 %v70_v0  ;;  %v118_v2 = vld [vmem:[#allocation7 + $0x78] sm:$0xff]  ;;  %v68_v3 = vld [vmem:[#allocation5 + $0x8] sm:$0xff]  ;;  %v117_v4 = vld [vmem:[#allocation7 + $0x70] sm:$0xff]  ;;  %s149_s12 = sshll.u32 %s280_s11, 4  ;;  %s151_s15 = sshll.u32 %s334_s5, 4  ;;  %s150_s12 = int_to_ptr.vmem [resolvable:$true] %s149_s12  ;;  %s152_s15 = int_to_ptr.hbm [resolvable:$true] %s151_s15 }
  0x10   :  { %123 = vmatpush.msra.mxu1 %v118_v2  ;;  %v116_v5 = vld [vmem:[#allocation7 + $0x68] sm:$0xff]  ;;  %v67_v6 = vld [vmem:[#allocation5] sm:$0xff]  ;;  %v66_v7 = vld [vmem:[#allocation2] sm:$0xff] }
  0x11   :  { %92 = vmatpush.msra.mxu0 %v69_v1  ;;  %v115_v8 = vld [vmem:[#allocation7 + $0x60] sm:$0xff]  ;;  %v114_v9 = vld [vmem:[#allocation7 + $0x58] sm:$0xff]  ;;  %v113_v10 = vld [vmem:[#allocation7 + $0x50] sm:$0xff] }
  0x12   :  { %124 = vmatpush.msra.mxu1 %v117_v4  ;;  %v112_v11 = vld [vmem:[#allocation7 + $0x48] sm:$0xff]  ;;  %v111_v12 = vld [vmem:[#allocation7 + $0x40] sm:$0xff]  ;;  %v110_v13 = vld [vmem:[#allocation7 + $0x38] sm:$0xff] }
  0x13   :  { %93 = vmatpush.msra.mxu0 %v68_v3  ;;  %v109_v14 = vld [vmem:[#allocation7 + $0x30] sm:$0xff]  ;;  %v108_v15 = vld [vmem:[#allocation7 + $0x28] sm:$0xff]  ;;  %v107_v16 = vld [vmem:[#allocation7 + $0x20] sm:$0xff] }
  0x14   :  { %125 = vmatpush.msra.mxu1 %v116_v5  ;;  %v106_v17 = vld [vmem:[#allocation7 + $0x18] sm:$0xff]  ;;  %v105_v18 = vld [vmem:[#allocation7 + $0x10] sm:$0xff]  ;;  %v104_v19 = vld [vmem:[#allocation7 + $0x8] sm:$0xff] }
  0x15   :  { %94 = vmatpush.msra.mxu0 %v67_v6  ;;  %v103_v20 = vld [vmem:[#allocation7] sm:$0xff]  ;;  %v169_v21 = vld [vmem:[%s331_s2] ss:$0 sm:$0xff] }
  0x16   :  { %162 = vmatmul.msk.f32.vlgmr.msra.gmra.mxu0 %vm75_vm0, %v66_v7  ;;  %126 = vmatpush.msra.mxu1 %v115_v8  ;;  %v170_v28 = vld [vmem:[%s333_s4] ss:$0 sm:$0xff] }
  0x18   :  { %127 = vmatpush.msra.mxu1 %v114_v9 }
  0x1a   :  { %128 = vmatpush.msra.mxu1 %v113_v10 }
  0x1c   :  { %129 = vmatpush.msra.mxu1 %v112_v11 }
  0x1e   :  { %130 = vmatpush.msra.mxu1 %v111_v12 }
  0x20   :  { %131 = vmatpush.msra.mxu1 %v110_v13 }
  0x22   :  { %132 = vmatpush.msra.mxu1 %v109_v14 }
  0x24   :  { %133 = vmatpush.msra.mxu1 %v108_v15 }
  0x26   :  { %134 = vmatpush.msra.mxu1 %v107_v16 }
  0x28   :  { %135 = vmatpush.msra.mxu1 %v106_v17 }
  0x2a   :  { %136 = vmatpush.msra.mxu1 %v105_v18 }
  0x2c   :  { %137 = vmatpush.msra.mxu1 %v104_v19 }
  0x2e   :  { %138 = vmatpush.msra.mxu1 %v103_v20 }
  0x93   :  { %v96_v22 = vpop.f32.mrf.mxu0 }
  0x94   :  { %v97_v23 = vadd.f32 %v169_v21, %v96_v22 }
  0x96   :  { %v99_v24 = vmul.f32 0.5, %v97_v23 }
  0x98   :  { %171 = vtanh.f32 %v99_v24 }
  0x9e   :  { %v172_v25 = vpop.eup %171 }
  0x9f   :  { %v101_v26 = vmul.f32 0.5, %v172_v25 }
  0xa1   :  { %v102_v27 = vadd.f32 0.5, %v101_v26 }
  0xa3   :  { %139 = vmatmul.f32.vlgmr.msra.gmra.mxu1 %v102_v27 }
 0x120   :  { %v140_v29 = vpop.f32.mrf.mxu1 }
 0x121   :  { %v141_v30 = vadd.f32 %v170_v28, %v140_v29 }
 0x123   :  { %143 = vst [vmem:[#allocation8] sm:$0xff] %v141_v30 }
 0x124   :  { %154 = dma.vmem_to_hbm [thread:$0]  %s150_s12, 128, %s152_s15, [#allocation4]  }
 0x125   :  { %273 = dma.done.wait [#allocation4], 128  }
 0x126   :  { %274 = vsyncadd [#allocation4], 4294967168 }
 0x127   :  { %159 = vsyncpa [#allocation3], 1 }
 0x128   :  { %160 = vsyncpa [#allocation6], 1 }
 0x129   :  { %161 = vsyncpa [#allocation4], 1 }

// kernel: tpu_custom_call.1
= control target key start
LH: loop header
LB: loop body
LE: loop exit
PB: predicated region body
PF: predicated region fallthrough
CT: control target
= control target key end

     0   :  { %10 = vsyncpa [#allocation3], 0  ;;  %s329_s0 = inlined_call_operand.hbm [shape: f32[8,32], index: 0, kind: input, shape index: {}]   ;;  %s330_s1 = inlined_call_operand.hbm [shape: f32[32,128], index: 1, kind: input, shape index: {}]   ;;  %s331_s2 = inlined_call_operand.vmem [shape: f32[1,128], index: 2, kind: input, shape index: {}]   ;;  %s332_s3 = inlined_call_operand.hbm [shape: f32[128,128], index: 3, kind: input, shape index: {}]   ;;  %s333_s4 = inlined_call_operand.vmem [shape: f32[1,128], index: 4, kind: input, shape index: {}]   ;;  %s334_s5 = inlined_call_operand.hbm [shape: f32[8,128], index: 5, kind: output, shape index: {}]  }
   0x1   :  { %11 = vsyncpa [#allocation6], 0  ;;  %s28_s20 = sshll.u32 %s330_s1, 4  ;;  %s29_s20 = int_to_ptr.hbm [resolvable:$true] %s28_s20 }
   0x2   :  { %12 = vsyncpa [#allocation4], 0  ;;  %s275_s21 = smov [#allocation5]   ;;  %s18_s25 = sshll.u32 %s329_s0, 4  ;;  %s19_s25 = int_to_ptr.hbm [resolvable:$true] %s18_s25 }
   0x3   :  { %s30_s22 = sshll.u32 %s275_s21, 4  ;;  %s276_s26 = smov 128   ;;  %s31_s22 = int_to_ptr.vmem [resolvable:$true] %s30_s22 }
   0x4   :  { %s277_s27 = smov 8   ;;  %s278_s28 = smov [#allocation2]  }
   0x5   :  { %36 = dma.hbm_to_vmem [thread:$0]  %s29_s20, 512, %s31_s22, [#allocation6], %s276_s26, %s276_s26, %s277_s27  }
   0x6   :  { %s20_s29 = sshll.u32 %s278_s28, 4  ;;  %s43_s7 = sshll.u32 %s332_s3, 4  ;;  %s21_s29 = int_to_ptr.vmem [resolvable:$true] %s20_s29  ;;  %s44_s7 = int_to_ptr.hbm [resolvable:$true] %s43_s7 }
   0x7   :  { %23 = dma.hbm_to_vmem [thread:$0]  %s19_s25, 128, %s21_s29, [#allocation3]  }
   0x8   :  { %s279_s1 = smov [#allocation7]  }
   0x9   :  { %s45_s8 = sshll.u32 %s279_s1, 4  ;;  %s46_s8 = int_to_ptr.vmem [resolvable:$true] %s45_s8 }
   0xa   :  { %51 = dma.hbm_to_vmem [thread:$0]  %s44_s7, 2048, %s46_s8, [#allocation6], %s276_s26, %s276_s26, %s277_s27  }
   0xb   :  { %269 = dma.done.wait [#allocation3], 128  }
   0xc   :  { %270 = vsyncadd [#allocation3], 4294967168 }
   0xd   :  { %271 = dma.done.wait [#allocation6], 2560  }
   0xe   :  { %272 = vsyncadd [#allocation6], 4294964736  ;;  %v70_v0 = vld [vmem:[#allocation5 + $0x18] sm:$0xff]  ;;  %v69_v1 = vld [vmem:[#allocation5 + $0x10] sm:$0xff]  ;;  %vm75_vm0 = vcmask 261120   ;;  %s280_s11 = smov [#allocation8]  }
   0xf   :  { %91 = vmatpush.msra.mxu0 %v70_v0  ;;  %v118_v2 = vld [vmem:[#allocation7 + $0x78] sm:$0xff]  ;;  %v68_v3 = vld [vmem:[#allocation5 + $0x8] sm:$0xff]  ;;  %v117_v4 = vld [vmem:[#allocation7 + $0x70] sm:$0xff]  ;;  %s149_s12 = sshll.u32 %s280_s11, 4  ;;  %s151_s15 = sshll.u32 %s334_s5, 4  ;;  %s150_s12 = int_to_ptr.vmem [resolvable:$true] %s149_s12  ;;  %s152_s15 = int_to_ptr.hbm [resolvable:$true] %s151_s15 }
  0x10   :  { %123 = vmatpush.msra.mxu1 %v118_v2  ;;  %v116_v5 = vld [vmem:[#allocation7 + $0x68] sm:$0xff]  ;;  %v67_v6 = vld [vmem:[#allocation5] sm:$0xff]  ;;  %v66_v7 = vld [vmem:[#allocation2] sm:$0xff] }
  0x11   :  { %92 = vmatpush.msra.mxu0 %v69_v1  ;;  %v115_v8 = vld [vmem:[#allocation7 + $0x60] sm:$0xff]  ;;  %v114_v9 = vld [vmem:[#allocation7 + $0x58] sm:$0xff]  ;;  %v113_v10 = vld [vmem:[#allocation7 + $0x50] sm:$0xff] }
  0x12   :  { %124 = vmatpush.msra.mxu1 %v117_v4  ;;  %v112_v11 = vld [vmem:[#allocation7 + $0x48] sm:$0xff]  ;;  %v111_v12 = vld [vmem:[#allocation7 + $0x40] sm:$0xff]  ;;  %v110_v13 = vld [vmem:[#allocation7 + $0x38] sm:$0xff] }
  0x13   :  { %93 = vmatpush.msra.mxu0 %v68_v3  ;;  %v109_v14 = vld [vmem:[#allocation7 + $0x30] sm:$0xff]  ;;  %v108_v15 = vld [vmem:[#allocation7 + $0x28] sm:$0xff]  ;;  %v107_v16 = vld [vmem:[#allocation7 + $0x20] sm:$0xff] }
  0x14   :  { %125 = vmatpush.msra.mxu1 %v116_v5  ;;  %v106_v17 = vld [vmem:[#allocation7 + $0x18] sm:$0xff]  ;;  %v105_v18 = vld [vmem:[#allocation7 + $0x10] sm:$0xff]  ;;  %v104_v19 = vld [vmem:[#allocation7 + $0x8] sm:$0xff] }
  0x15   :  { %94 = vmatpush.msra.mxu0 %v67_v6  ;;  %v103_v20 = vld [vmem:[#allocation7] sm:$0xff]  ;;  %v169_v21 = vld [vmem:[%s331_s2] ss:$0 sm:$0xff] }
  0x16   :  { %162 = vmatmul.msk.f32.vlgmr.msra.gmra.mxu0 %vm75_vm0, %v66_v7  ;;  %126 = vmatpush.msra.mxu1 %v115_v8  ;;  %v170_v28 = vld [vmem:[%s333_s4] ss:$0 sm:$0xff] }
  0x18   :  { %127 = vmatpush.msra.mxu1 %v114_v9 }
  0x1a   :  { %128 = vmatpush.msra.mxu1 %v113_v10 }
  0x1c   :  { %129 = vmatpush.msra.mxu1 %v112_v11 }
  0x1e   :  { %130 = vmatpush.msra.mxu1 %v111_v12 }
  0x20   :  { %131 = vmatpush.msra.mxu1 %v110_v13 }
  0x22   :  { %132 = vmatpush.msra.mxu1 %v109_v14 }
  0x24   :  { %133 = vmatpush.msra.mxu1 %v108_v15 }
  0x26   :  { %134 = vmatpush.msra.mxu1 %v107_v16 }
  0x28   :  { %135 = vmatpush.msra.mxu1 %v106_v17 }
  0x2a   :  { %136 = vmatpush.msra.mxu1 %v105_v18 }
  0x2c   :  { %137 = vmatpush.msra.mxu1 %v104_v19 }
  0x2e   :  { %138 = vmatpush.msra.mxu1 %v103_v20 }
  0x93   :  { %v96_v22 = vpop.f32.mrf.mxu0 }
  0x94   :  { %v97_v23 = vadd.f32 %v169_v21, %v96_v22 }
  0x96   :  { %v99_v24 = vmul.f32 0.5, %v97_v23 }
  0x98   :  { %171 = vtanh.f32 %v99_v24 }
  0x9e   :  { %v172_v25 = vpop.eup %171 }
  0x9f   :  { %v101_v26 = vmul.f32 0.5, %v172_v25 }
  0xa1   :  { %v102_v27 = vadd.f32 0.5, %v101_v26 }
  0xa3   :  { %139 = vmatmul.f32.vlgmr.msra.gmra.mxu1 %v102_v27 }
 0x120   :  { %v140_v29 = vpop.f32.mrf.mxu1 }
 0x121   :  { %v141_v30 = vadd.f32 %v170_v28, %v140_v29 }
 0x123   :  { %143 = vst [vmem:[#allocation8] sm:$0xff] %v141_v30 }
 0x124   :  { %154 = dma.vmem_to_hbm [thread:$0]  %s150_s12, 128, %s152_s15, [#allocation4]  }
 0x125   :  { %273 = dma.done.wait [#allocation4], 128  }
 0x126   :  { %274 = vsyncadd [#allocation4], 4294967168 }
 0x127   :  { %159 = vsyncpa [#allocation3], 1 }
 0x128   :  { %160 = vsyncpa [#allocation6], 1 }
 0x129   :  { %161 = vsyncpa [#allocation4], 1 }

</bundles_post_ra>
